<compile_context>
chip_gen: v5e
topology: v5e:2x2
jax: 0.10.0
libtpu: 0.0.40
codegen_flags: <defaults>
</compile_context>

<pallas_src>
import jax
import jax.numpy as jnp
from jax.experimental import pallas as pl
from jax.experimental.pallas import tpu as pltpu


def _round_up(x, m):
    return (x + m - 1) // m * m


def _make_kernel(num_inputs, dot_dtype):
    def kernel(*refs):
        xs = refs[:num_inputs]
        wps = refs[num_inputs:2 * num_inputs]
        bp_ref, w1_ref, b1_ref, w2_ref, b2_ref, o_ref = refs[2 * num_inputs:]

        # --- "pre" layer: concat(inputs) @ W_pre + b_pre expressed as a sum of
        #     per-input partial matmuls (no concatenated activation needed).
        acc = jnp.dot(xs[0][...], wps[0][...], preferred_element_type=jnp.float32)
        for i in range(1, num_inputs):
            acc = acc + jnp.dot(
                xs[i][...], wps[i][...], preferred_element_type=jnp.float32
            )
        h0 = acc + bp_ref[...].astype(jnp.float32)  # no activation on "pre"

        # --- linear1 + tanh (elementwise in f32; MXU inputs in dot_dtype).
        h1 = jnp.tanh(
            jnp.dot(h0.astype(dot_dtype), w1_ref[...],
                    preferred_element_type=jnp.float32)
            + b1_ref[...].astype(jnp.float32)
        )

        # --- linear2 + tanh.
        y = jnp.tanh(
            jnp.dot(h1.astype(dot_dtype), w2_ref[...],
                    preferred_element_type=jnp.float32)
            + b2_ref[...].astype(jnp.float32)
        )

        o_ref[...] = y.astype(o_ref.dtype)

    return kernel


def mult_linear_net_forward(inputs, params, *, use_bf16=False, block_rows=512):
    """inputs: list of [batch, in_features] arrays; params: dict of weights/biases.

    use_bf16=True stores activations/weights in bf16 (halves HBM traffic on
    v6e/v7x); accumulation and all elementwise math stay f32 (v5e-safe).
    """
    num_inputs = len(inputs)
    batch, in_features = inputs[0].shape

    w_pre, b_pre = params["w_pre"], params["b_pre"]
    w1, b1 = params["w1"], params["b1"]
    w2, b2 = params["w2"], params["b2"]
    hidden_nodes = w1.shape[1]
    out_features = w2.shape[1]

    # Lane-dense padded feature widths (multiples of 128): zero-padded weights /
    # biases keep the math exact while making every matmul output and the final
    # store full-width (unmasked vst).
    LANE = 128
    pre_pad = _round_up(in_features, LANE)
    hid_pad = _round_up(hidden_nodes, LANE)
    out_pad = _round_up(out_features, LANE)

    store_dtype = jnp.bfloat16 if use_bf16 else jnp.float32
    dot_dtype = store_dtype

    def pad2(a, rows, cols):
        r, c = a.shape
        return jnp.pad(a, ((0, rows - r), (0, cols - c))).astype(store_dtype)

    # Split W_pre row-wise into per-input chunks (matches torch.cat(dim=1) order).
    wp_chunks = [
        pad2(w_pre[i * in_features:(i + 1) * in_features, :], in_features, pre_pad)
        for i in range(num_inputs)
    ]
    bp_p = pad2(b_pre, 1, pre_pad)
    w1_p = pad2(w1, pre_pad, hid_pad)
    b1_p = pad2(b1, 1, hid_pad)
    w2_p = pad2(w2, hid_pad, out_pad)
    b2_p = pad2(b2, 1, out_pad)

    # Batch tiling: large row tiles (multiple of 8 f32 sublanes), padded batch.
    tm = min(block_rows, _round_up(batch, 8))
    padded_batch = _round_up(batch, tm)
    n_tiles = padded_batch // tm

    xs = [
        jnp.pad(x, ((0, padded_batch - batch), (0, 0))).astype(store_dtype)
        for x in inputs
    ]

    x_spec = pl.BlockSpec((tm, in_features), lambda i: (i, 0))

    def resident(shape):
        # Same block index every grid step -> stays resident in VMEM (no re-DMA).
        return pl.BlockSpec(shape, lambda i: (0, 0))

    in_specs = (
        [x_spec] * num_inputs
        + [resident((in_features, pre_pad))] * num_inputs
        + [
            resident((1, pre_pad)),
            resident((pre_pad, hid_pad)),
            resident((1, hid_pad)),
            resident((hid_pad, out_pad)),
            resident((1, out_pad)),
        ]
    )
    out_spec = pl.BlockSpec((tm, out_pad), lambda i: (i, 0))

    bytes_per = 2 if use_bf16 else 4
    weight_elems = (
        num_inputs * in_features * pre_pad
        + pre_pad * hid_pad
        + hid_pad * out_pad
        + pre_pad + hid_pad + out_pad
    )
    cost = pl.CostEstimate(
        flops=2 * padded_batch * (
            num_inputs * in_features * pre_pad
            + pre_pad * hid_pad
            + hid_pad * out_pad
        ),
        transcendentals=padded_batch * (hid_pad + out_pad),
        bytes_accessed=(
            padded_batch * num_inputs * in_features * bytes_per  # inputs
            + weight_elems * bytes_per                           # weights/biases
            + padded_batch * out_pad * 4                         # f32 output
        ),
    )

    out = pl.pallas_call(
        _make_kernel(num_inputs, dot_dtype),
        out_shape=jax.ShapeDtypeStruct((padded_batch, out_pad), jnp.float32),
        grid_spec=pltpu.PrefetchScalarGridSpec(
            num_scalar_prefetch=0,
            grid=(n_tiles,),
            in_specs=in_specs,
            out_specs=out_spec,
        ),
        compiler_params=pltpu.CompilerParams(
            dimension_semantics=("parallel",),
        ),
        cost_estimate=cost,
    )(*xs, *wp_chunks, bp_p, w1_p, b1_p, w2_p, b2_p)

    return out[:batch, :out_features]


def init_params(key, in_features, hidden_nodes, out_features, num_inputs):
    """Deterministic init mimicking nn.Linear's U(-1/sqrt(fan_in), 1/sqrt(fan_in))."""
    def linear(k, fan_in, fan_out):
        kw, kb = jax.random.split(k)
        bound = 1.0 / jnp.sqrt(fan_in)
        w = jax.random.uniform(kw, (fan_in, fan_out), jnp.float32, -bound, bound)
        b = jax.random.uniform(kb, (1, fan_out), jnp.float32, -bound, bound)
        return w, b

    k_pre, k1, k2 = jax.random.split(key, 3)
    w_pre, b_pre = linear(k_pre, in_features * num_inputs, in_features)
    w1, b1 = linear(k1, in_features, hidden_nodes)
    w2, b2 = linear(k2, hidden_nodes, out_features)
    return {
        "w_pre": w_pre, "b_pre": b_pre,
        "w1": w1, "b1": b1,
        "w2": w2, "b2": b2,
    }


def reference_forward(inputs, params):
    x = jnp.concatenate(inputs, axis=1)
    h0 = x @ params["w_pre"] + params["b_pre"]
    h1 = jnp.tanh(h0 @ params["w1"] + params["b1"])
    return jnp.tanh(h1 @ params["w2"] + params["b2"])


if __name__ == "__main__":
    in_features = 16
    hidden_nodes = 32
    out_features = 8
    num_inputs = 3

    key = jax.random.PRNGKey(0)
    k_params, k_in = jax.random.split(key)
    params = init_params(k_params, in_features, hidden_nodes, out_features, num_inputs)

    # --- small batch (module-spec shapes), f32 path ---
    batch = 2
    in_keys = jax.random.split(k_in, num_inputs)
    inputs = [jax.random.normal(k, (batch, in_features), jnp.float32) for k in in_keys]

    out = jax.block_until_ready(mult_linear_net_forward(inputs, params))
    ref = reference_forward(inputs, params)
    assert out.shape == (batch, out_features)
    assert jnp.allclose(out, ref, atol=1e-5, rtol=1e-5)

    # --- larger batch to exercise the batch grid (multiple tiles + row padding) ---
    big_batch = 600
    big_keys = jax.random.split(jax.random.PRNGKey(1), num_inputs)
    big_inputs = [
        jax.random.normal(k, (big_batch, in_features), jnp.float32) for k in big_keys
    ]
    big_out = jax.block_until_ready(
        mult_linear_net_forward(big_inputs, params, block_rows=256)
    )
    big_ref = reference_forward(big_inputs, params)
    assert big_out.shape == (big_batch, out_features)
    assert jnp.allclose(big_out, big_ref, atol=1e-4, rtol=1e-4)

    # --- bf16 storage path (v6e/v7x bandwidth optimization), looser tolerance ---
    bf16_out = jax.block_until_ready(
        mult_linear_net_forward(big_inputs, params, use_bf16=True, block_rows=256)
    )
    assert jnp.allclose(bf16_out, big_ref, atol=5e-2, rtol=5e-2)

    print("KERNEL_OK")
</pallas_src>

<mosaic_0001>
module attributes {stable_mosaic.version = 11 : i64} {
  func.func @kernel(%arg0: i32, %arg1: memref<8x16xf32, #tpu.memory_space<vmem>>, %arg2: memref<8x16xf32, #tpu.memory_space<vmem>>, %arg3: memref<8x16xf32, #tpu.memory_space<vmem>>, %arg4: memref<16x128xf32, #tpu.memory_space<vmem>>, %arg5: memref<16x128xf32, #tpu.memory_space<vmem>>, %arg6: memref<16x128xf32, #tpu.memory_space<vmem>>, %arg7: memref<1x128xf32, #tpu.memory_space<vmem>>, %arg8: memref<128x128xf32, #tpu.memory_space<vmem>>, %arg9: memref<1x128xf32, #tpu.memory_space<vmem>>, %arg10: memref<128x128xf32, #tpu.memory_space<vmem>>, %arg11: memref<1x128xf32, #tpu.memory_space<vmem>>, %arg12: memref<8x128xf32, #tpu.memory_space<vmem>>) attributes {dimension_semantics = [#tpu.dimension_semantics<parallel>], iteration_bounds = array<i64: 1>, scalar_prefetch = 0 : i64, scratch_operands = 0 : i64, tpu.core_type = #tpu.core_type<tc>, window_params = [{transform_indices = @transform_0, window_bounds = array<i64: 8, 16>}, {transform_indices = @transform_1, window_bounds = array<i64: 8, 16>}, {transform_indices = @transform_2, window_bounds = array<i64: 8, 16>}, {pipeline_mode = #tpu.pipeline_mode<synchronous>, transform_indices = @transform_3, window_bounds = array<i64: 16, 128>}, {pipeline_mode = #tpu.pipeline_mode<synchronous>, transform_indices = @transform_4, window_bounds = array<i64: 16, 128>}, {pipeline_mode = #tpu.pipeline_mode<synchronous>, transform_indices = @transform_5, window_bounds = array<i64: 16, 128>}, {pipeline_mode = #tpu.pipeline_mode<synchronous>, transform_indices = @transform_6, window_bounds = array<i64: 1, 128>}, {pipeline_mode = #tpu.pipeline_mode<synchronous>, transform_indices = @transform_7, window_bounds = array<i64: 128, 128>}, {pipeline_mode = #tpu.pipeline_mode<synchronous>, transform_indices = @transform_8, window_bounds = array<i64: 1, 128>}, {pipeline_mode = #tpu.pipeline_mode<synchronous>, transform_indices = @transform_9, window_bounds = array<i64: 128, 128>}, {pipeline_mode = #tpu.pipeline_mode<synchronous>, transform_indices = @transform_10, window_bounds = array<i64: 1, 128>}, {transform_indices = @transform_11, window_bounds = array<i64: 8, 128>}]} {
    %c0 = arith.constant 0 : index
    %c0_0 = arith.constant 0 : index
    %0 = vector.load %arg1[%c0, %c0_0] : memref<8x16xf32, #tpu.memory_space<vmem>>, vector<8x16xf32>
    %c0_1 = arith.constant 0 : index
    %c0_2 = arith.constant 0 : index
    %1 = vector.load %arg4[%c0_1, %c0_2] : memref<16x128xf32, #tpu.memory_space<vmem>>, vector<16x128xf32>
    %cst = arith.constant dense<0.000000e+00> : vector<8x128xf32>
    %2 = tpu.matmul %0, %1, %cst {dimension_numbers = #tpu.dot_dimension_numbers<[1], [0], [0], [1], [0, 0, 1, 1], [], []>} : vector<8x16xf32>, vector<16x128xf32>, vector<8x128xf32> -> vector<8x128xf32>
    %c0_3 = arith.constant 0 : index
    %c0_4 = arith.constant 0 : index
    %3 = vector.load %arg2[%c0_3, %c0_4] : memref<8x16xf32, #tpu.memory_space<vmem>>, vector<8x16xf32>
    %c0_5 = arith.constant 0 : index
    %c0_6 = arith.constant 0 : index
    %4 = vector.load %arg5[%c0_5, %c0_6] : memref<16x128xf32, #tpu.memory_space<vmem>>, vector<16x128xf32>
    %cst_7 = arith.constant dense<0.000000e+00> : vector<8x128xf32>
    %5 = tpu.matmul %3, %4, %cst_7 {dimension_numbers = #tpu.dot_dimension_numbers<[1], [0], [0], [1], [0, 0, 1, 1], [], []>} : vector<8x16xf32>, vector<16x128xf32>, vector<8x128xf32> -> vector<8x128xf32>
    %6 = arith.addf %2, %5 : vector<8x128xf32>
    %c0_8 = arith.constant 0 : index
    %c0_9 = arith.constant 0 : index
    %7 = vector.load %arg3[%c0_8, %c0_9] : memref<8x16xf32, #tpu.memory_space<vmem>>, vector<8x16xf32>
    %c0_10 = arith.constant 0 : index
    %c0_11 = arith.constant 0 : index
    %8 = vector.load %arg6[%c0_10, %c0_11] : memref<16x128xf32, #tpu.memory_space<vmem>>, vector<16x128xf32>
    %cst_12 = arith.constant dense<0.000000e+00> : vector<8x128xf32>
    %9 = tpu.matmul %7, %8, %cst_12 {dimension_numbers = #tpu.dot_dimension_numbers<[1], [0], [0], [1], [0, 0, 1, 1], [], []>} : vector<8x16xf32>, vector<16x128xf32>, vector<8x128xf32> -> vector<8x128xf32>
    %10 = arith.addf %6, %9 : vector<8x128xf32>
    %c0_13 = arith.constant 0 : index
    %c0_14 = arith.constant 0 : index
    %11 = vector.load %arg7[%c0_13, %c0_14] : memref<1x128xf32, #tpu.memory_space<vmem>>, vector<1x128xf32>
    %12 = vector.broadcast %11 : vector<1x128xf32> to vector<8x128xf32>
    %13 = arith.addf %10, %12 : vector<8x128xf32>
    %c0_15 = arith.constant 0 : index
    %c0_16 = arith.constant 0 : index
    %14 = vector.load %arg8[%c0_15, %c0_16] : memref<128x128xf32, #tpu.memory_space<vmem>>, vector<128x128xf32>
    %cst_17 = arith.constant dense<0.000000e+00> : vector<8x128xf32>
    %15 = tpu.matmul %13, %14, %cst_17 {dimension_numbers = #tpu.dot_dimension_numbers<[1], [0], [0], [1], [0, 0, 1, 1], [], []>} : vector<8x128xf32>, vector<128x128xf32>, vector<8x128xf32> -> vector<8x128xf32>
    %c0_18 = arith.constant 0 : index
    %c0_19 = arith.constant 0 : index
    %16 = vector.load %arg9[%c0_18, %c0_19] : memref<1x128xf32, #tpu.memory_space<vmem>>, vector<1x128xf32>
    %17 = vector.broadcast %16 : vector<1x128xf32> to vector<8x128xf32>
    %18 = arith.addf %15, %17 : vector<8x128xf32>
    %19 = math.tanh %18 : vector<8x128xf32>
    %c0_20 = arith.constant 0 : index
    %c0_21 = arith.constant 0 : index
    %20 = vector.load %arg10[%c0_20, %c0_21] : memref<128x128xf32, #tpu.memory_space<vmem>>, vector<128x128xf32>
    %cst_22 = arith.constant dense<0.000000e+00> : vector<8x128xf32>
    %21 = tpu.matmul %19, %20, %cst_22 {dimension_numbers = #tpu.dot_dimension_numbers<[1], [0], [0], [1], [0, 0, 1, 1], [], []>} : vector<8x128xf32>, vector<128x128xf32>, vector<8x128xf32> -> vector<8x128xf32>
    %c0_23 = arith.constant 0 : index
    %c0_24 = arith.constant 0 : index
    %22 = vector.load %arg11[%c0_23, %c0_24] : memref<1x128xf32, #tpu.memory_space<vmem>>, vector<1x128xf32>
    %23 = vector.broadcast %22 : vector<1x128xf32> to vector<8x128xf32>
    %24 = arith.addf %21, %23 : vector<8x128xf32>
    %25 = math.tanh %24 : vector<8x128xf32>
    %c0_25 = arith.constant 0 : index
    %c0_26 = arith.constant 0 : index
    %26 = vector.load %arg12[%c0_25, %c0_26] : memref<8x128xf32, #tpu.memory_space<vmem>>, vector<8x128xf32>
    tpu.vector_store %arg12[%c0_25, %c0_26], %25 {strides = array<i32>} : memref<8x128xf32, #tpu.memory_space<vmem>>, vector<8x128xf32>,
    return
  }
  func.func @transform_0(%arg0: i32) -> (i32, i32) {
    %c0_i32 = arith.constant 0 : i32
    %c0_i32_0 = arith.constant 0 : i32
    return %arg0, %c0_i32 : i32, i32
  }
  func.func @transform_1(%arg0: i32) -> (i32, i32) {
    %c0_i32 = arith.constant 0 : i32
    %c0_i32_0 = arith.constant 0 : i32
    return %arg0, %c0_i32 : i32, i32
  }
  func.func @transform_2(%arg0: i32) -> (i32, i32) {
    %c0_i32 = arith.constant 0 : i32
    %c0_i32_0 = arith.constant 0 : i32
    return %arg0, %c0_i32 : i32, i32
  }
  func.func @transform_3(%arg0: i32) -> (i32, i32) {
    %c0_i32 = arith.constant 0 : i32
    %c0_i32_0 = arith.constant 0 : i32
    %c0_i32_1 = arith.constant 0 : i32
    return %c0_i32, %c0_i32_0 : i32, i32
  }
  func.func @transform_4(%arg0: i32) -> (i32, i32) {
    %c0_i32 = arith.constant 0 : i32
    %c0_i32_0 = arith.constant 0 : i32
    %c0_i32_1 = arith.constant 0 : i32
    return %c0_i32, %c0_i32_0 : i32, i32
  }
  func.func @transform_5(%arg0: i32) -> (i32, i32) {
    %c0_i32 = arith.constant 0 : i32
    %c0_i32_0 = arith.constant 0 : i32
    %c0_i32_1 = arith.constant 0 : i32
    return %c0_i32, %c0_i32_0 : i32, i32
  }
  func.func @transform_6(%arg0: i32) -> (i32, i32) {
    %c0_i32 = arith.constant 0 : i32
    %c0_i32_0 = arith.constant 0 : i32
    %c0_i32_1 = arith.constant 0 : i32
    return %c0_i32, %c0_i32_0 : i32, i32
  }
  func.func @transform_7(%arg0: i32) -> (i32, i32) {
    %c0_i32 = arith.constant 0 : i32
    %c0_i32_0 = arith.constant 0 : i32
    %c0_i32_1 = arith.constant 0 : i32
    return %c0_i32, %c0_i32_0 : i32, i32
  }
  func.func @transform_8(%arg0: i32) -> (i32, i32) {
    %c0_i32 = arith.constant 0 : i32
    %c0_i32_0 = arith.constant 0 : i32
    %c0_i32_1 = arith.constant 0 : i32
    return %c0_i32, %c0_i32_0 : i32, i32
  }
  func.func @transform_9(%arg0: i32) -> (i32, i32) {
    %c0_i32 = arith.constant 0 : i32
    %c0_i32_0 = arith.constant 0 : i32
    %c0_i32_1 = arith.constant 0 : i32
    return %c0_i32, %c0_i32_0 : i32, i32
  }
  func.func @transform_10(%arg0: i32) -> (i32, i32) {
    %c0_i32 = arith.constant 0 : i32
    %c0_i32_0 = arith.constant 0 : i32
    %c0_i32_1 = arith.constant 0 : i32
    return %c0_i32, %c0_i32_0 : i32, i32
  }
  func.func @transform_11(%arg0: i32) -> (i32, i32) {
    %c0_i32 = arith.constant 0 : i32
    %c0_i32_0 = arith.constant 0 : i32
    return %arg0, %c0_i32 : i32, i32
  }
}

</mosaic_0001>

<bundles_post_ra>
// kernel: tpu_custom_call.1
= control target key start
LH: loop header
LB: loop body
LE: loop exit
PB: predicated region body
PF: predicated region fallthrough
CT: control target
= control target key end

     0   :  { %16 = vsyncpa [#allocation3], 0  ;;  %s721_s0 = inlined_call_operand.hbm [shape: f32[8,16], index: 0, kind: input, shape index: {}]   ;;  %s722_s1 = inlined_call_operand.hbm [shape: f32[8,16], index: 1, kind: input, shape index: {}]   ;;  %s723_s2 = inlined_call_operand.hbm [shape: f32[8,16], index: 2, kind: input, shape index: {}]   ;;  %s724_s3 = inlined_call_operand.hbm [shape: f32[16,128], index: 3, kind: input, shape index: {}]   ;;  %s725_s4 = inlined_call_operand.hbm [shape: f32[16,128], index: 4, kind: input, shape index: {}]   ;;  %s726_s5 = inlined_call_operand.hbm [shape: f32[16,128], index: 5, kind: input, shape index: {}]   ;;  %s727_s6 = inlined_call_operand.vmem [shape: f32[1,128], index: 6, kind: input, shape index: {}]   ;;  %s728_s7 = inlined_call_operand.hbm [shape: f32[128,128], index: 7, kind: input, shape index: {}]   ;;  %s729_s8 = inlined_call_operand.vmem [shape: f32[1,128], index: 8, kind: input, shape index: {}]   ;;  %s730_s9 = inlined_call_operand.hbm [shape: f32[128,128], index: 9, kind: input, shape index: {}]   ;;  %s731_s10 = inlined_call_operand.vmem [shape: f32[1,128], index: 10, kind: input, shape index: {}]   ;;  %s732_s11 = inlined_call_operand.hbm [shape: f32[8,128], index: 11, kind: output, shape index: {}]  }
   0x1   :  { %17 = vsyncpa [#allocation6], 0 }
   0x2   :  { %18 = vsyncpa [#allocation9], 0 }
   0x3   :  { %19 = vsyncpa [#allocation12], 0 }
   0x4   :  { %20 = vsyncpa [#allocation15], 0  ;;  %s38_s19 = sshll.u32 %s722_s1, 4  ;;  %s39_s19 = int_to_ptr.hbm [resolvable:$true] %s38_s19 }
   0x5   :  { %21 = vsyncpa [#allocation4], 0  ;;  %s596_s20 = smov [#allocation5]   ;;  %s59_s24 = sshll.u32 %s724_s3, 4  ;;  %s60_s24 = int_to_ptr.hbm [resolvable:$true] %s59_s24 }
   0x6   :  { %s40_s21 = sshll.u32 %s596_s20, 4  ;;  %s597_s25 = smov [#allocation8]   ;;  %s41_s21 = int_to_ptr.vmem [resolvable:$true] %s40_s21 }
   0x7   :  { %43 = dma.hbm_to_vmem [thread:$0]  %s39_s19, 128, %s41_s21, [#allocation6]  }
   0x8   :  { %s61_s26 = sshll.u32 %s597_s25, 4  ;;  %s598_s27 = smov 128   ;;  %s62_s26 = int_to_ptr.vmem [resolvable:$true] %s61_s26 }
   0x9   :  { %s599_s28 = smov 8   ;;  %s85_s30 = sshll.u32 %s726_s5, 4  ;;  %s86_s30 = int_to_ptr.hbm [resolvable:$true] %s85_s30 }
   0xa   :  { %67 = dma.hbm_to_vmem [thread:$0]  %s60_s24, 256, %s62_s26, [#allocation9], %s598_s27, %s598_s27, %s599_s28  }
   0xb   :  { %s600_s12 = smov [#allocation11]   ;;  %s27_s15 = sshll.u32 %s721_s0, 4  ;;  %s28_s15 = int_to_ptr.hbm [resolvable:$true] %s27_s15 }
   0xc   :  { %s87_s13 = sshll.u32 %s600_s12, 4  ;;  %s601_s16 = smov [#allocation2]   ;;  %s88_s13 = int_to_ptr.vmem [resolvable:$true] %s87_s13 }
   0xd   :  { %93 = dma.hbm_to_vmem [thread:$0]  %s86_s30, 256, %s88_s13, [#allocation12], %s598_s27, %s598_s27, %s599_s28  }
   0xe   :  { %s29_s17 = sshll.u32 %s601_s16, 4  ;;  %s49_s20 = sshll.u32 %s723_s2, 4  ;;  %s30_s17 = int_to_ptr.vmem [resolvable:$true] %s29_s17  ;;  %s50_s20 = int_to_ptr.hbm [resolvable:$true] %s49_s20 }
   0xf   :  { %32 = dma.hbm_to_vmem [thread:$0]  %s28_s15, 128, %s30_s17, [#allocation3]  }
  0x10   :  { %s72_s22 = sshll.u32 %s725_s4, 4  ;;  %s602_s23 = smov [#allocation7]   ;;  %s73_s22 = int_to_ptr.hbm [resolvable:$true] %s72_s22 }
  0x11   :  { %s51_s0 = sshll.u32 %s602_s23, 4  ;;  %s603_s24 = smov [#allocation10]   ;;  %s52_s0 = int_to_ptr.vmem [resolvable:$true] %s51_s0 }
  0x12   :  { %54 = dma.hbm_to_vmem [thread:$0]  %s50_s20, 128, %s52_s0, [#allocation6]  }
  0x13   :  { %s74_s25 = sshll.u32 %s603_s24, 4  ;;  %s100_s29 = sshll.u32 %s728_s7, 4  ;;  %s75_s25 = int_to_ptr.vmem [resolvable:$true] %s74_s25  ;;  %s101_s29 = int_to_ptr.hbm [resolvable:$true] %s100_s29 }
  0x14   :  { %80 = dma.hbm_to_vmem [thread:$0]  %s73_s22, 256, %s75_s25, [#allocation9], %s598_s27, %s598_s27, %s599_s28  }
  0x15   :  { %s115_s4 = sshll.u32 %s730_s9, 4  ;;  %s604_s12 = smov [#allocation13]   ;;  %s116_s4 = int_to_ptr.hbm [resolvable:$true] %s115_s4 }
  0x16   :  { %s102_s13 = sshll.u32 %s604_s12, 4  ;;  %s605_s3 = smov [#allocation14]   ;;  %s103_s13 = int_to_ptr.vmem [resolvable:$true] %s102_s13 }
  0x17   :  { %108 = dma.hbm_to_vmem [thread:$0]  %s101_s29, 2048, %s103_s13, [#allocation12], %s598_s27, %s598_s27, %s599_s28  }
  0x18   :  { %s117_s7 = sshll.u32 %s605_s3, 4  ;;  %s118_s7 = int_to_ptr.vmem [resolvable:$true] %s117_s7 }
  0x19   :  { %123 = dma.hbm_to_vmem [thread:$0]  %s116_s4, 2048, %s118_s7, [#allocation15], %s598_s27, %s598_s27, %s599_s28  }
  0x1a   :  { %584 = dma.done.wait [#allocation3], 128  }
  0x1b   :  { %585 = vsyncadd [#allocation3], 4294967168 }
  0x1c   :  { %586 = dma.done.wait [#allocation6], 256  }
  0x1d   :  { %587 = vsyncadd [#allocation6], 4294967040 }
  0x1e   :  { %588 = dma.done.wait [#allocation9], 512  }
  0x1f   :  { %589 = vsyncadd [#allocation9], 4294966784 }
  0x20   :  { %590 = dma.done.wait [#allocation12], 2304  }
  0x21   :  { %591 = vsyncadd [#allocation12], 4294964992 }
  0x22   :  { %592 = dma.done.wait [#allocation15], 2048  }
  0x23   :  { %593 = vsyncadd [#allocation15], 4294965248  ;;  %v163_v0 = vld [vmem:[#allocation10 + $0x8] sm:$0xff]  ;;  %v162_v1 = vld [vmem:[#allocation10] sm:$0xff]  ;;  %vm164_vm0 = vcmask 130048   ;;  %s606_s16 = smov [#allocation16]  }
  0x24   :  { %182 = vmatpush.msra.mxu1 %v163_v0  ;;  %v161_v2 = vld [vmem:[#allocation5] sm:$0xff]  ;;  %v213_v3 = vld [vmem:[#allocation11 + $0x8] sm:$0xff]  ;;  %v212_v4 = vld [vmem:[#allocation11] sm:$0xff]  ;;  %s331_s17 = sshll.u32 %s606_s16, 4  ;;  %s333_s20 = sshll.u32 %s732_s11, 4  ;;  %s332_s17 = int_to_ptr.vmem [resolvable:$true] %s331_s17  ;;  %s334_s20 = int_to_ptr.hbm [resolvable:$true] %s333_s20 }
  0x25   :  { %v160_v5 = vld [vmem:[#allocation8 + $0x8] sm:$0xff]  ;;  %231 = vmatpush.msra.mxu2 %v213_v3  ;;  %v211_v6 = vld [vmem:[#allocation7] sm:$0xff]  ;;  %v159_v8 = vld [vmem:[#allocation8] sm:$0xff] }
  0x26   :  { %183 = vmatpush.msra.mxu1 %v162_v1  ;;  %v258_v7 = vld [vmem:[#allocation13 + $0x78] sm:$0xff]  ;;  %v257_v9 = vld [vmem:[#allocation13 + $0x70] sm:$0xff]  ;;  %v256_v10 = vld [vmem:[#allocation13 + $0x68] sm:$0xff] }
  0x27   :  { %347 = vmatmul.msk.f32.vlgmr.msra.gmra.mxu1 %vm164_vm0, %v161_v2  ;;  %232 = vmatpush.msra.mxu2 %v212_v4  ;;  %v158_v11 = vld [vmem:[#allocation2] sm:$0xff]  ;;  %v255_v12 = vld [vmem:[#allocation13 + $0x60] sm:$0xff]  ;;  %v253_v14 = vld [vmem:[#allocation13 + $0x50] sm:$0xff] }
  0x28   :  { %205 = vmatpush.msrb.mxu1 %v160_v5  ;;  %349 = vmatmul.msk.f32.vlgmr.msra.gmra.mxu2 %vm164_vm0, %v211_v6  ;;  %v254_v13 = vld [vmem:[#allocation13 + $0x58] sm:$0xff]  ;;  %v252_v15 = vld [vmem:[#allocation13 + $0x48] sm:$0xff]  ;;  %v251_v16 = vld [vmem:[#allocation13 + $0x40] sm:$0xff] }
  0x29   :  { %263 = vmatpush.msra.mxu3 %v258_v7  ;;  %v250_v17 = vld [vmem:[#allocation13 + $0x38] sm:$0xff]  ;;  %v249_v18 = vld [vmem:[#allocation13 + $0x30] sm:$0xff]  ;;  %v248_v19 = vld [vmem:[#allocation13 + $0x28] sm:$0xff] }
  0x2a   :  { %206 = vmatpush.msrb.mxu1 %v159_v8  ;;  %v247_v20 = vld [vmem:[#allocation13 + $0x20] sm:$0xff]  ;;  %v246_v21 = vld [vmem:[#allocation13 + $0x18] sm:$0xff]  ;;  %v245_v22 = vld [vmem:[#allocation13 + $0x10] sm:$0xff] }
  0x2b   :  { %264 = vmatpush.msra.mxu3 %v257_v9  ;;  %v244_v23 = vld [vmem:[#allocation13 + $0x8] sm:$0xff]  ;;  %v243_v24 = vld [vmem:[#allocation13] sm:$0xff]  ;;  %v299_v25 = vld [vmem:[#allocation14 + $0x78] sm:$0xff] }
  0x2c   :  { %v298_v26 = vld [vmem:[#allocation14 + $0x70] sm:$0xff]  ;;  %304 = vmatpush.msra.mxu0 %v299_v25  ;;  %v297_v27 = vld [vmem:[#allocation14 + $0x68] sm:$0xff]  ;;  %v296_v28 = vld [vmem:[#allocation14 + $0x60] sm:$0xff] }
  0x2d   :  { %265 = vmatpush.msra.mxu3 %v256_v10  ;;  %v295_v29 = vld [vmem:[#allocation14 + $0x58] sm:$0xff]  ;;  %v294_v30 = vld [vmem:[#allocation14 + $0x50] sm:$0xff]  ;;  %v293_v31 = vld [vmem:[#allocation14 + $0x48] sm:$0xff] }
  0x2e   :  { %305 = vmatpush.msra.mxu0 %v298_v26  ;;  %v292_v32 = vld [vmem:[#allocation14 + $0x40] sm:$0xff]  ;;  %v291_v33 = vld [vmem:[#allocation14 + $0x38] sm:$0xff]  ;;  %v290_v34 = vld [vmem:[#allocation14 + $0x30] sm:$0xff] }
  0x2f   :  { %348 = vmatmul.msk.f32.vlgmr.msrb.gmra.mxu1 %vm164_vm0, %v158_v11  ;;  %266 = vmatpush.msra.mxu3 %v255_v12  ;;  %v289_v36 = vld [vmem:[#allocation14 + $0x28] sm:$0xff]  ;;  %v361_v40 = vld [vmem:[%s727_s6] ss:$0 sm:$0xff]  ;;  %v288_v43 = vld [vmem:[#allocation14 + $0x20] sm:$0xff] }
  0x30   :  { %306 = vmatpush.msra.mxu0 %v297_v27  ;;  %v287_v44 = vld [vmem:[#allocation14 + $0x18] sm:$0xff]  ;;  %v286_v45 = vld [vmem:[#allocation14 + $0x10] sm:$0xff]  ;;  %v285_v46 = vld [vmem:[#allocation14 + $0x8] sm:$0xff] }
  0x31   :  { %267 = vmatpush.msra.mxu3 %v254_v13  ;;  %v284_v47 = vld [vmem:[#allocation14] sm:$0xff]  ;;  %v362_v48 = vld [vmem:[%s729_s8] ss:$0 sm:$0xff] }
  0x32   :  { %307 = vmatpush.msra.mxu0 %v296_v28  ;;  %v363_v52 = vld [vmem:[%s731_s10] ss:$0 sm:$0xff] }
  0x33   :  { %268 = vmatpush.msra.mxu3 %v253_v14 }
  0x34   :  { %308 = vmatpush.msra.mxu0 %v295_v29 }
  0x35   :  { %269 = vmatpush.msra.mxu3 %v252_v15 }
  0x36   :  { %309 = vmatpush.msra.mxu0 %v294_v30 }
  0x37   :  { %270 = vmatpush.msra.mxu3 %v251_v16 }
  0x38   :  { %310 = vmatpush.msra.mxu0 %v293_v31 }
  0x39   :  { %271 = vmatpush.msra.mxu3 %v250_v17 }
  0x3a   :  { %311 = vmatpush.msra.mxu0 %v292_v32 }
  0x3b   :  { %272 = vmatpush.msra.mxu3 %v249_v18 }
  0x3c   :  { %312 = vmatpush.msra.mxu0 %v291_v33 }
  0x3d   :  { %273 = vmatpush.msra.mxu3 %v248_v19 }
  0x3e   :  { %313 = vmatpush.msra.mxu0 %v290_v34 }
  0x3f   :  { %274 = vmatpush.msra.mxu3 %v247_v20 }
  0x40   :  { %314 = vmatpush.msra.mxu0 %v289_v36 }
  0x41   :  { %275 = vmatpush.msra.mxu3 %v246_v21 }
  0x42   :  { %315 = vmatpush.msra.mxu0 %v288_v43 }
  0x43   :  { %276 = vmatpush.msra.mxu3 %v245_v22 }
  0x44   :  { %316 = vmatpush.msra.mxu0 %v287_v44 }
  0x45   :  { %277 = vmatpush.msra.mxu3 %v244_v23 }
  0x46   :  { %317 = vmatpush.msra.mxu0 %v286_v45 }
  0x47   :  { %278 = vmatpush.msra.mxu3 %v243_v24 }
  0x48   :  { %318 = vmatpush.msra.mxu0 %v285_v46 }
  0x4a   :  { %319 = vmatpush.msra.mxu0 %v284_v47 }
  0xa4   :  { %v185_v35 = vpop.f32.mrf.mxu1 }
  0xab   :  { %v234_v38 = vpop.f32.mrf.mxu2 }
  0xac   :  { %v208_v37 = vpop.f32.mrf.mxu1 }
  0xad   :  { %v209_v39 = vadd.f32 %v208_v37, %v185_v35 }
  0xaf   :  { %v237_v41 = vadd.f32 %v234_v38, %v209_v39 }
  0xb1   :  { %v242_v42 = vadd.f32 %v361_v40, %v237_v41 }
  0xb3   :  { %279 = vmatmul.f32.vlgmr.msra.gmra.mxu3 %v242_v42 }
 0x136   :  { %v280_v49 = vpop.f32.mrf.mxu3 }
 0x137   :  { %v281_v50 = vadd.f32 %v362_v48, %v280_v49 }
 0x139   :  { %364 = vtanh.f32 %v281_v50 }
 0x13f   :  { %v365_v51 = vpop.eup %364 }
 0x140   :  { %320 = vmatmul.f32.vlgmr.msra.gmra.mxu0 %v365_v51 }
 0x1bd   :  { %v321_v53 = vpop.f32.mrf.mxu0 }
 0x1be   :  { %v322_v54 = vadd.f32 %v363_v52, %v321_v53 }
 0x1c0   :  { %366 = vtanh.f32 %v322_v54 }
 0x1c6   :  { %v367_v55 = vpop.eup %366 }
 0x1c7   :  { %325 = vst [vmem:[#allocation16] sm:$0xff] %v367_v55 }
 0x1c8   :  { %336 = dma.vmem_to_hbm [thread:$0]  %s332_s17, 128, %s334_s20, [#allocation4]  }
 0x1c9   :  { %594 = dma.done.wait [#allocation4], 128  }
 0x1ca   :  { %595 = vsyncadd [#allocation4], 4294967168 }
 0x1cb   :  { %341 = vsyncpa [#allocation3], 1 }
 0x1cc   :  { %342 = vsyncpa [#allocation6], 1 }
 0x1cd   :  { %343 = vsyncpa [#allocation9], 1 }
 0x1ce   :  { %344 = vsyncpa [#allocation12], 1 }
 0x1cf   :  { %345 = vsyncpa [#allocation15], 1 }
 0x1d0   :  { %346 = vsyncpa [#allocation4], 1 }

</bundles_post_ra>
